<compile_context>
chip_gen: v7x
topology: tpu7x:2x2x1
jax: 0.10.0
libtpu: 0.0.40
codegen_flags: <defaults>
</compile_context>

<pallas_src>
import functools

import jax
import jax.numpy as jnp
from jax.experimental import pallas as pl
from jax.experimental.pallas import tpu as pltpu


def _multi_tensorcore():
    """True on chips where one JAX device spans 2 TensorCores (megacore / v7x)."""
    try:
        kind = jax.devices()[0].device_kind.lower()
    except Exception:
        return False
    return any(tag in kind for tag in ("v4", "v5p", "v7"))


def _mse_partial_sums_kernel(x_ref, y_ref, o_ref, *,
                             rows, tile_rows, lanes, acc_rows,
                             chunks, chunks_per_part, ragged_last, has_overhang):
    p = pl.program_id(0)            # parallel slice (TC shard on megacore/v7x)
    c = pl.program_id(1)            # reduction chunk within the slice
    block_idx = p * chunks_per_part + c

    @pl.when(c == 0)
    def _init():
        o_ref[...] = jnp.zeros_like(o_ref)

    def partial_sum(mask_tail):
        d = x_ref[...].astype(jnp.float32) - y_ref[...].astype(jnp.float32)
        sq = d * d
        if mask_tail:
            # Rows past the end of the slab hold undefined DMA data: zero them.
            row_ids = block_idx * tile_rows + jax.lax.broadcasted_iota(
                jnp.int32, (tile_rows, lanes), 0)
            sq = jnp.where(row_ids < rows, sq, 0.0)
        # Fold (tile_rows,128) -> (acc_rows,128) with pure VPU adds;
        # acc_rows=32 gives 4 independent vreg add chains per step.
        return sq.reshape(tile_rows // acc_rows, acc_rows, lanes).sum(axis=0)

    n_full = chunks - 1 if ragged_last else chunks
    if ragged_last or has_overhang:
        # Non-tail chunks: pure streaming (no mask work).
        @pl.when(block_idx < n_full)
        def _full():
            o_ref[...] += partial_sum(False)

        if ragged_last:
            # Only the final valid chunk pays for the iota/compare/select.
            @pl.when(block_idx == chunks - 1)
            def _tail():
                o_ref[...] += partial_sum(True)
        # block_idx >= chunks (overhang of the 2-way split): contributes nothing.
    else:
        o_ref[...] += partial_sum(False)


def mse_loss_pallas(x, y, reduction="mean", *,
                    block_bytes=2 << 20, num_parts=None, lanes=128):
    """MSE loss (mean or sum reduction) computed with a Pallas TPU kernel."""
    assert x.shape == y.shape, "mse_loss requires matching shapes"
    assert reduction in ("mean", "sum")
    n = x.size

    xf = x.reshape(-1)
    yf = y.reshape(-1)

    # Keep kernel rows a multiple of 8 sublanes by aligning to 8*128 elements.
    align = lanes * 8
    n_main = (n // align) * align

    tail_sum = None
    if n_main == 0:
        # Tiny input (< 1024 elements): pad to one (8,128) slab; copy negligible.
        x_main = jnp.pad(xf, (0, align - n))
        y_main = jnp.pad(yf, (0, align - n))
        n_main = align
    else:
        # Zero-copy view when aligned; otherwise slice the aligned prefix and
        # fold the < 1024-element tail with a tiny XLA sum (no full pad copy).
        x_main = xf if n_main == n else xf[:n_main]
        y_main = yf if n_main == n else yf[:n_main]
        if n_main != n:
            dt = xf[n_main:].astype(jnp.float32) - yf[n_main:].astype(jnp.float32)
            tail_sum = jnp.sum(dt * dt)

    rows = n_main // lanes
    x2 = x_main.reshape(rows, lanes)
    y2 = y_main.reshape(rows, lanes)

    # Tile sizing from a byte budget (larger blocks -> fewer ~0.35us grid steps).
    itemsize = max(jnp.dtype(x.dtype).itemsize, jnp.dtype(y.dtype).itemsize)
    tgt_rows = max(32, block_bytes // (lanes * itemsize))
    if rows <= tgt_rows:
        tile_rows = rows                      # single chunk, full extent
        chunks = 1
    else:
        tile_rows = max(32, (tgt_rows // 32) * 32)   # mult. of 32: f32/bf16/int8 safe
        chunks = pl.cdiv(rows, tile_rows)
    acc_rows = 32 if tile_rows % 32 == 0 else 8
    ragged_last = (rows % tile_rows) != 0

    # 2-way split of the reduction across TensorCores only where it can help.
    if num_parts is None:
        num_parts = 2 if (_multi_tensorcore() and chunks >= 2) else 1
    num_parts = max(1, min(num_parts, chunks))
    chunks_per_part = pl.cdiv(chunks, num_parts)
    has_overhang = num_parts * chunks_per_part != chunks

    kernel = functools.partial(
        _mse_partial_sums_kernel,
        rows=rows, tile_rows=tile_rows, lanes=lanes, acc_rows=acc_rows,
        chunks=chunks, chunks_per_part=chunks_per_part,
        ragged_last=ragged_last, has_overhang=has_overhang)

    def in_map(p, c):
        # Clamp the (possible) overhanging block to the last valid block; the
        # kernel skips its accumulation, so re-reading it is harmless.
        return (jnp.minimum(p * chunks_per_part + c, chunks - 1), 0)

    in_bytes_per_block = tile_rows * lanes * (
        jnp.dtype(x.dtype).itemsize + jnp.dtype(y.dtype).itemsize)
    vmem_limit = int(2 * in_bytes_per_block + (8 << 20))   # double-buffered inputs + headroom

    cost = pl.CostEstimate(
        flops=3 * n,
        transcendentals=0,
        bytes_accessed=n_main * (jnp.dtype(x.dtype).itemsize
                                 + jnp.dtype(y.dtype).itemsize)
                       + num_parts * acc_rows * lanes * 4,
    )

    partials = pl.pallas_call(
        kernel,
        out_shape=jax.ShapeDtypeStruct((num_parts * acc_rows, lanes), jnp.float32),
        grid_spec=pltpu.PrefetchScalarGridSpec(
            num_scalar_prefetch=0,
            grid=(num_parts, chunks_per_part),
            in_specs=[
                pl.BlockSpec((tile_rows, lanes), in_map),
                pl.BlockSpec((tile_rows, lanes), in_map),
            ],
            out_specs=pl.BlockSpec((acc_rows, lanes), lambda p, c: (p, 0)),
        ),
        compiler_params=pltpu.CompilerParams(
            dimension_semantics=("parallel", "arbitrary"),
            vmem_limit_bytes=vmem_limit),
        cost_estimate=cost,
    )(x2, y2)

    total = jnp.sum(partials)                 # tiny final cross-lane reduce in XLA
    if tail_sum is not None:
        total = total + tail_sum
    if reduction == "mean":
        total = total / jnp.float32(n)
    return total.astype(jnp.result_type(x.dtype, y.dtype))


if __name__ == "__main__":
    key = jax.random.PRNGKey(0)
    kx, ky = jax.random.split(key)
    # Small NCHW-like inputs, consistent with an elementwise loss module.
    x = jax.random.normal(kx, (2, 4, 16, 16), dtype=jnp.float32)
    y = jax.random.normal(ky, (2, 4, 16, 16), dtype=jnp.float32)

    loss = mse_loss_pallas(x, y, reduction="mean")
    jax.block_until_ready(loss)
    ref = jnp.mean((x - y) ** 2)
    assert jnp.allclose(loss, ref, rtol=1e-5, atol=1e-6), (loss, ref)

    def _check(shape, dtype, reduction, rtol, **kw):
        ka, kb = jax.random.split(jax.random.fold_in(key, hash(shape) & 0x7FFFFFFF))
        a = jax.random.normal(ka, shape, dtype=dtype)
        b = jax.random.normal(kb, shape, dtype=dtype)
        got = jnp.asarray(mse_loss_pallas(a, b, reduction=reduction, **kw),
                          dtype=jnp.float32)
        d = a.astype(jnp.float32) - b.astype(jnp.float32)
        want = jnp.sum(d * d) if reduction == "sum" else jnp.mean(d * d)
        assert jnp.allclose(got, want, rtol=rtol, atol=1e-5), (shape, got, want)

    # Ragged last chunk + forced 2-way split (no overhang).
    _check((40, 128), jnp.float32, "sum", 1e-5, block_bytes=16 * 1024, num_parts=2)
    # Odd chunk count + forced 2-way split -> overhang block skipped + ragged tail.
    _check((72, 128), jnp.float32, "sum", 1e-5, block_bytes=16 * 1024, num_parts=2)
    # Single-part multi-chunk path.
    _check((64, 128), jnp.float32, "sum", 1e-5, block_bytes=16 * 1024, num_parts=1)
    # Misaligned size: aligned prefix in kernel + tiny XLA tail sum.
    _check((33, 200), jnp.float32, "mean", 1e-5)
    # Tiny input -> pad-to-one-slab path.
    _check((5, 7, 13), jnp.float32, "sum", 1e-5)
    # bf16 inputs with non-full (packed-layout) blocks.
    _check((64, 256), jnp.bfloat16, "mean", 2e-2, block_bytes=16 * 1024)

    print("KERNEL_OK")
</pallas_src>

<mosaic_0001>
module attributes {stable_mosaic.version = 11 : i64} {
  func.func @_mse_partial_sums_kernel(%arg0: i32, %arg1: i32, %arg2: memref<16x128xf32, #tpu.memory_space<vmem>>, %arg3: memref<16x128xf32, #tpu.memory_space<vmem>>, %arg4: memref<8x128xf32, #tpu.memory_space<vmem>>) attributes {dimension_semantics = [#tpu.dimension_semantics<parallel>, #tpu.dimension_semantics<arbitrary>], iteration_bounds = array<i64: 1, 1>, scalar_prefetch = 0 : i64, scratch_operands = 0 : i64, tpu.core_type = #tpu.core_type<tc>, window_params = [{transform_indices = @transform_0, window_bounds = array<i64: 16, 128>}, {transform_indices = @transform_1, window_bounds = array<i64: 16, 128>}, {transform_indices = @transform_2, window_bounds = array<i64: 8, 128>}]} {
    %c0_i32 = arith.constant 0 : i32
    %0 = arith.cmpi eq, %arg1, %c0_i32 : i32
    %1 = arith.extui %0 : i1 to i32
    %c0_i32_0 = arith.constant 0 : i32
    %2 = arith.cmpi ne, %1, %c0_i32_0 : i32
    scf.if %2 {
      %cst_8 = arith.constant 0.000000e+00 : f32
      %12 = vector.broadcast %cst_8 : f32 to vector<8x128xf32>
      %c0_9 = arith.constant 0 : index
      %c0_10 = arith.constant 0 : index
      %13 = vector.load %arg4[%c0_9, %c0_10] : memref<8x128xf32, #tpu.memory_space<vmem>>, vector<8x128xf32>
      tpu.vector_store %arg4[%c0_9, %c0_10], %12 {strides = array<i32>} : memref<8x128xf32, #tpu.memory_space<vmem>>, vector<8x128xf32>,
    } else {
    }
    %c0 = arith.constant 0 : index
    %c0_1 = arith.constant 0 : index
    %3 = vector.load %arg4[%c0, %c0_1] : memref<8x128xf32, #tpu.memory_space<vmem>>, vector<8x128xf32>
    %c0_2 = arith.constant 0 : index
    %c0_3 = arith.constant 0 : index
    %4 = vector.load %arg2[%c0_2, %c0_3] : memref<16x128xf32, #tpu.memory_space<vmem>>, vector<16x128xf32>
    %c0_4 = arith.constant 0 : index
    %c0_5 = arith.constant 0 : index
    %5 = vector.load %arg3[%c0_4, %c0_5] : memref<16x128xf32, #tpu.memory_space<vmem>>, vector<16x128xf32>
    %6 = arith.subf %4, %5 : vector<16x128xf32>
    %7 = arith.mulf %6, %6 : vector<16x128xf32>
    %8 = vector.shape_cast %7 : vector<16x128xf32> to vector<2x8x128xf32>
    %cst = arith.constant dense<0.000000e+00> : vector<8x128xf32>
    %9 = vector.multi_reduction <add>, %8, %cst [0] : vector<2x8x128xf32> to vector<8x128xf32>
    %10 = arith.addf %3, %9 : vector<8x128xf32>
    %c0_6 = arith.constant 0 : index
    %c0_7 = arith.constant 0 : index
    %11 = vector.load %arg4[%c0_6, %c0_7] : memref<8x128xf32, #tpu.memory_space<vmem>>, vector<8x128xf32>
    tpu.vector_store %arg4[%c0_6, %c0_7], %10 {strides = array<i32>} : memref<8x128xf32, #tpu.memory_space<vmem>>, vector<8x128xf32>,
    return
  }
  func.func @transform_0(%arg0: i32, %arg1: i32) -> (i32, i32) {
    %c1_i32 = arith.constant 1 : i32
    %0 = arith.muli %arg0, %c1_i32 : i32
    %1 = arith.addi %0, %arg1 : i32
    %c0_i32 = arith.constant 0 : i32
    %2 = arith.minsi %1, %c0_i32 : i32
    %c0_i32_0 = arith.constant 0 : i32
    %c0_i32_1 = arith.constant 0 : i32
    return %2, %c0_i32_0 : i32, i32
  }
  func.func @transform_1(%arg0: i32, %arg1: i32) -> (i32, i32) {
    %c1_i32 = arith.constant 1 : i32
    %0 = arith.muli %arg0, %c1_i32 : i32
    %1 = arith.addi %0, %arg1 : i32
    %c0_i32 = arith.constant 0 : i32
    %2 = arith.minsi %1, %c0_i32 : i32
    %c0_i32_0 = arith.constant 0 : i32
    %c0_i32_1 = arith.constant 0 : i32
    return %2, %c0_i32_0 : i32, i32
  }
  func.func @transform_2(%arg0: i32, %arg1: i32) -> (i32, i32) {
    %c0_i32 = arith.constant 0 : i32
    %c0_i32_0 = arith.constant 0 : i32
    return %arg0, %c0_i32 : i32, i32
  }
}

</mosaic_0001>

<bundles_post_ra>
// kernel: tpu_custom_call.1
= control target key start
LH: loop header
LB: loop body
LE: loop exit
PB: predicated region body
PF: predicated region fallthrough
CT: control target
= control target key end

     0   :  { %7 = vsyncpa [#allocation3], 0  ;;  %s231_s0 = inlined_call_operand.hbm [shape: f32[16,128], index: 0, kind: input, shape index: {}]   ;;  %s232_s1 = inlined_call_operand.hbm [shape: f32[16,128], index: 1, kind: input, shape index: {}]   ;;  %s233_s2 = inlined_call_operand.hbm [shape: f32[8,128], index: 2, kind: output, shape index: {}]  }
   0x1   :  { %8 = vsyncpa [#allocation6], 0 }
   0x2   :  { %9 = vsyncpa [#allocation4], 0  ;;  %s175_s9 = smov [#allocation2]   ;;  %s103_s13 = scalar_lea.hbm %s231_s0, 256 }
   0x3   :  { %s21_s10 = sshll.u32 %s175_s9, 4  ;;  %p104_p0 = scmp.ne.s32.totalorder %s231_s0, %s103_s13  ;;  %s22_s10 = int_to_ptr.vmem [resolvable:$true] %s21_s10 }
   0x4   :  { %p107_p1 = scmp.lt.u32.totalorder %s103_s13, %s231_s0 }
   0x6   :  { %p109_p2 = pnand %p107_p1, %p104_p0 }
   0x8   :  { %112 = shalt.err (!%p109_p2)
}
   0x9   :  { %s113_s18 = scalar_lea.vmem %s22_s10, 256  ;;  %p118_p4 = scmp.lt.s32.totalorder %s22_s10, %s22_s10 }
   0xa   :  { %p114_p3 = scmp.ne.s32.totalorder %s22_s10, %s113_s18  ;;  %p119_p5 = scmp.lt.s32.totalorder %s113_s18, %s113_s18 }
   0xc   :  { %p120_p6 = por %p119_p5, %p118_p4 }
   0xe   :  { %p121_p7 = pnand %p120_p6, %p114_p3 }
  0x10   :  { %124 = shalt.err (!%p121_p7)
}
  0x11   :  { %s176_s19 = smov 128   ;;  %s177_s20 = smov 8  }
  0x12   :  { %27 = dma.hbm_to_vmem [thread:$0]  %s231_s0, 256, %s22_s10, [#allocation3], %s176_s19, %s176_s19, %s177_s20  }
  0x13   :  { %s178_s23 = smov [#allocation5]   ;;  %s125_s27 = scalar_lea.hbm %s232_s1, 256 }
  0x14   :  { %s39_s24 = sshll.u32 %s178_s23, 4  ;;  %p126_p8 = scmp.ne.s32.totalorder %s232_s1, %s125_s27  ;;  %s40_s24 = int_to_ptr.vmem [resolvable:$true] %s39_s24 }
  0x15   :  { %p129_p9 = scmp.lt.u32.totalorder %s125_s27, %s232_s1 }
  0x17   :  { %p131_p10 = pnand %p129_p9, %p126_p8 }
  0x19   :  { %134 = shalt.err (!%p131_p10)
}
  0x1a   :  { %s135_s4 = scalar_lea.vmem %s40_s24, 256  ;;  %p140_p12 = scmp.lt.s32.totalorder %s40_s24, %s40_s24 }
  0x1b   :  { %p136_p11 = scmp.ne.s32.totalorder %s40_s24, %s135_s4  ;;  %p141_p13 = scmp.lt.s32.totalorder %s135_s4, %s135_s4 }
  0x1d   :  { %p142_p0 = por %p141_p13, %p140_p12 }
  0x1f   :  { %p143_p1 = pnand %p142_p0, %p136_p11 }
  0x21   :  { %146 = shalt.err (!%p143_p1)
}
  0x22   :  { %45 = dma.hbm_to_vmem [thread:$0]  %s232_s1, 256, %s40_s24, [#allocation6], %s176_s19, %s176_s19, %s177_s20  }
  0x23   :  { %169 = dma.done.wait [#allocation3], 256  }
  0x24   :  { %170 = vsyncadd [#allocation3], 4294967040 }
  0x25   :  { %171 = dma.done.wait [#allocation6], 256  }
  0x26   :  { %172 = vsyncadd [#allocation6], 4294967040  ;;  %v66_v0 = vld [vmem:[#allocation2] sm:$0xff]  ;;  %v67_v1 = vld [vmem:[#allocation2 + $0x8] sm:$0xff]  ;;  %s179_s6 = smov [#allocation7]  }
  0x27   :  { %v68_v2 = vld [vmem:[#allocation5] sm:$0xff]  ;;  %v69_v3 = vld [vmem:[#allocation5 + $0x8] sm:$0xff]  ;;  %s83_s7 = sshll.u32 %s179_s6, 4  ;;  %s84_s7 = int_to_ptr.vmem [resolvable:$true] %s83_s7 }
  0x28   :  { %v70_v4 = vsub.f32 %v66_v0, %v68_v2  ;;  %v71_v5 = vsub.f32 %v67_v1, %v69_v3  ;;  %s147_s8 = scalar_lea.vmem %s84_s7, 128  ;;  %p152_p3 = scmp.lt.s32.totalorder %s84_s7, %s84_s7 }
  0x29   :  { %p148_p2 = scmp.ne.s32.totalorder %s84_s7, %s147_s8  ;;  %p153_p4 = scmp.lt.s32.totalorder %s147_s8, %s147_s8 }
  0x2a   :  { %v72_v6 = vmul.f32 %v70_v4, %v70_v4  ;;  %v73_v7 = vmul.f32 %v71_v5, %v71_v5 }
  0x2b   :  { %p154_p5 = por %p153_p4, %p152_p3 }
  0x2c   :  { %v74_v8 = vadd.f32 %v73_v7, %v72_v6 }
  0x2d   :  { %p155_p6 = pnand %p154_p5, %p148_p2 }
  0x2e   :  { %76 = vst [vmem:[#allocation7] sm:$0xff] %v74_v8 }
  0x2f   :  { %158 = shalt.err (!%p155_p6)
}
  0x30   :  { %s159_s10 = scalar_lea.hbm %s233_s2, 128 }
  0x31   :  { %p160_p7 = scmp.ne.s32.totalorder %s233_s2, %s159_s10  ;;  %p163_p8 = scmp.lt.u32.totalorder %s159_s10, %s233_s2 }
  0x33   :  { %p165_p9 = pnand %p163_p8, %p160_p7 }
  0x35   :  { %168 = shalt.err (!%p165_p9)
}
  0x36   :  { %86 = dma.vmem_to_hbm [thread:$0]  %s84_s7, 128, %s233_s2, [#allocation4]  }
  0x37   :  { %173 = dma.done.wait [#allocation4], 128  }
  0x38   :  { %174 = vsyncadd [#allocation4], 4294967168 }
  0x39   :  { %90 = vsyncpa [#allocation3], 1 }
  0x3a   :  { %91 = vsyncpa [#allocation6], 1 }
  0x3b   :  { %92 = vsyncpa [#allocation4], 1 }

</bundles_post_ra>
